<compile_context>
chip_gen: v7x
topology: tpu7x:2x2x1
jax: 0.10.0
libtpu: 0.0.40
codegen_flags: <defaults>
</compile_context>

<pallas_src>
import functools
import math

import jax
import jax.numpy as jnp
from jax.experimental import pallas as pl
from jax.experimental.pallas import tpu as pltpu

EPS = 1e-5
_VMEM_LIMIT = 48 * 1024 * 1024          # <= physical VMEM on all generations
_NUM_CORES = 2                          # stats-pass split for 2-TC chips
_FUSED_F32_BYTES = 4 * 1024 * 1024      # fused-path working-set gate


# ---------------------------------------------------------------------------
# Fused path: whole array resident in VMEM, exact centered variance.
# ---------------------------------------------------------------------------
def _fused_kernel(x_ref, gamma_ref, beta_ref, o_ref):
    x = x_ref[...].astype(jnp.float32)
    inv_n = jnp.float32(1.0 / x.shape[0])
    mean = jnp.sum(x, axis=0, keepdims=True) * inv_n
    xc = x - mean
    var = jnp.sum(xc * xc, axis=0, keepdims=True) * inv_n
    inv_std = jax.lax.rsqrt(var + EPS)
    scale = gamma_ref[...] * inv_std
    o_ref[...] = (xc * scale + beta_ref[...]).astype(o_ref.dtype)


# ---------------------------------------------------------------------------
# Pass 1 (streamed): per-core partial sum / sum-of-squares over row tiles.
# Accumulates directly into the (core-indexed) output block under pl.when.
# ---------------------------------------------------------------------------
def _stats_kernel(x_ref, sum_ref, sumsq_ref, *,
                  n_rows_g, tile_rows, tiles_per_core):
    c = pl.program_id(0)
    t = pl.program_id(1)

    @pl.when(t == 0)
    def _init():
        sum_ref[...] = jnp.zeros_like(sum_ref)
        sumsq_ref[...] = jnp.zeros_like(sumsq_ref)

    # Absolute (unclamped) tile index -> row mask for the partial last tile
    # and for fully-overshooting tiles (their index_map is clamped, the mask
    # zeroes their contribution).
    row_start = (c * tiles_per_core + t) * tile_rows
    remaining = n_rows_g - row_start
    dg = x_ref.shape[1]
    row_ids = jax.lax.broadcasted_iota(jnp.int32, (tile_rows, dg), 0)
    x = jnp.where(row_ids < remaining, x_ref[...].astype(jnp.float32), 0.0)

    # Per-lane partial sums on the MXU (keeps VPU/XLU slots free; HBM-bound
    # pass, so the M=1 matmul shape is irrelevant).
    ones = jnp.ones((1, tile_rows), jnp.float32)
    sum_ref[...] += jnp.dot(ones, x, preferred_element_type=jnp.float32)
    sumsq_ref[...] += jnp.dot(ones, x * x, preferred_element_type=jnp.float32)


# ---------------------------------------------------------------------------
# Pass 2 (streamed): y = x * scale + shift (single FMA per element).
# ---------------------------------------------------------------------------
def _apply_kernel(x_ref, scale_ref, shift_ref, o_ref):
    x = x_ref[...].astype(scale_ref.dtype)
    o_ref[...] = (x * scale_ref[...] + shift_ref[...]).astype(o_ref.dtype)


def normalization_forward(x, gamma, beta, *,
                          target_tile_bytes=4 << 20,
                          fused_vmem_bytes=_FUSED_F32_BYTES):
    """BatchNorm1d-style normalization of (B, S, D) over all B*S rows."""
    B, S, D = x.shape
    N = B * S
    dt = x.dtype
    itemsize = jnp.dtype(dt).itemsize

    x2d = x.reshape(N, D)
    gamma_f32 = gamma.astype(jnp.float32).reshape(1, D)
    beta_f32 = beta.astype(jnp.float32).reshape(1, D)

    # ---- fused single-call path (1 HBM read + 1 write) ---------------------
    if N * D * 4 <= fused_vmem_bytes:
        y2d = pl.pallas_call(
            _fused_kernel,
            out_shape=jax.ShapeDtypeStruct((N, D), dt),
            grid_spec=pltpu.PrefetchScalarGridSpec(
                num_scalar_prefetch=0,
                grid=(1,),
                in_specs=[pl.BlockSpec((N, D), lambda i: (0, 0)),
                          pl.BlockSpec((1, D), lambda i: (0, 0)),
                          pl.BlockSpec((1, D), lambda i: (0, 0))],
                out_specs=pl.BlockSpec((N, D), lambda i: (0, 0))),
            compiler_params=pltpu.CompilerParams(
                dimension_semantics=("arbitrary",),
                vmem_limit_bytes=_VMEM_LIMIT),
        )(x2d, gamma_f32, beta_f32)
        return y2d.reshape(B, S, D)

    # ---- two streamed, pipelined passes ------------------------------------
    # Lane-dense grouping for small D: view (N, D) as (N/g, g*D) so streamed
    # stores are full 128-lane width.  Only when the reshape is a pure
    # row-major view (N divisible by g); otherwise keep (N, D) and accept
    # masked partial stores (cheaper than a host relayout copy).
    group = 1
    if D < 128 and 128 % D == 0 and N % (128 // D) == 0:
        group = 128 // D
    Dg = group * D
    Ng = N // group
    xg = x2d.reshape(Ng, Dg)

    # ~4 MiB row tiles (f32-equivalent), multiple of 32 rows (covers bf16
    # sublane packing).  Full-extent single tile when everything fits.
    bytes_per_row = Dg * 4
    tile_rows = max(32, (target_tile_bytes // bytes_per_row) // 32 * 32)
    if tile_rows >= Ng:
        tile_rows = Ng
    num_tiles = pl.cdiv(Ng, tile_rows)

    num_cores = _NUM_CORES if num_tiles >= _NUM_CORES else 1
    tiles_per_core = pl.cdiv(num_tiles, num_cores)

    def x_index_map(c, t):
        # Clamp overshoot tiles to the last valid block; their contribution
        # is zeroed by the in-kernel row mask.
        return (jnp.minimum(c * tiles_per_core + t, num_tiles - 1), 0)

    # ---- pass 1: per-core partial (sum, sumsq) ------------------------------
    partial_sum, partial_sq = pl.pallas_call(
        functools.partial(_stats_kernel, n_rows_g=Ng, tile_rows=tile_rows,
                          tiles_per_core=tiles_per_core),
        out_shape=(jax.ShapeDtypeStruct((num_cores, Dg), jnp.float32),
                   jax.ShapeDtypeStruct((num_cores, Dg), jnp.float32)),
        grid_spec=pltpu.PrefetchScalarGridSpec(
            num_scalar_prefetch=0,
            grid=(num_cores, tiles_per_core),
            in_specs=[pl.BlockSpec((tile_rows, Dg), x_index_map)],
            out_specs=[pl.BlockSpec((1, Dg), lambda c, t: (c, 0)),
                       pl.BlockSpec((1, Dg), lambda c, t: (c, 0))]),
        compiler_params=pltpu.CompilerParams(
            dimension_semantics=("parallel", "arbitrary"),
            vmem_limit_bytes=_VMEM_LIMIT),
        cost_estimate=pl.CostEstimate(
            flops=5 * N * D,
            transcendentals=0,
            bytes_accessed=N * D * itemsize + 2 * num_cores * Dg * 4),
    )(xg)

    # ---- tiny finalize in plain jnp (D-sized arrays) ------------------------
    total_s = partial_sum.sum(axis=0).reshape(group, D).sum(axis=0)
    total_ss = partial_sq.sum(axis=0).reshape(group, D).sum(axis=0)
    inv_n = jnp.float32(1.0 / N)
    mean = total_s * inv_n
    var = jnp.maximum(total_ss * inv_n - mean * mean, 0.0)
    inv_std = jax.lax.rsqrt(var + EPS)
    scale = gamma.astype(jnp.float32) * inv_std
    shift = beta.astype(jnp.float32) - mean * scale

    # bf16 inputs: do the streamed FMA in bf16 (native VALU on v6e/v7x).
    comp_dt = jnp.bfloat16 if jnp.dtype(dt) == jnp.dtype(jnp.bfloat16) \
        else jnp.float32
    scale_g = jnp.tile(scale, group).reshape(1, Dg).astype(comp_dt)
    shift_g = jnp.tile(shift, group).reshape(1, Dg).astype(comp_dt)

    # ---- pass 2: y = x * scale + shift (streaming FMA) ----------------------
    yg = pl.pallas_call(
        _apply_kernel,
        out_shape=jax.ShapeDtypeStruct((Ng, Dg), dt),
        grid_spec=pltpu.PrefetchScalarGridSpec(
            num_scalar_prefetch=0,
            grid=(num_tiles,),
            in_specs=[pl.BlockSpec((tile_rows, Dg), lambda i: (i, 0)),
                      pl.BlockSpec((1, Dg), lambda i: (0, 0)),
                      pl.BlockSpec((1, Dg), lambda i: (0, 0))],
            out_specs=pl.BlockSpec((tile_rows, Dg), lambda i: (i, 0))),
        compiler_params=pltpu.CompilerParams(
            dimension_semantics=("parallel",),
            vmem_limit_bytes=_VMEM_LIMIT),
        cost_estimate=pl.CostEstimate(
            flops=2 * N * D,
            transcendentals=0,
            bytes_accessed=2 * N * D * itemsize + 2 * Dg * 4),
    )(xg, scale_g, shift_g)

    return yg.reshape(B, S, D)


def _reference(x, gamma, beta):
    B, S, D = x.shape
    x2d = x.reshape(-1, D).astype(jnp.float32)
    mean = jnp.mean(x2d, axis=0, keepdims=True)
    var = jnp.mean((x2d - mean) ** 2, axis=0, keepdims=True)
    y = (x2d - mean) / jnp.sqrt(var + EPS) * gamma + beta
    return y.reshape(B, S, D)


if __name__ == "__main__":
    key = jax.random.PRNGKey(0)
    k1, k2, k3, k4, k5 = jax.random.split(key, 5)

    # --- test 1: primary small shape (fused single-call path) --------------
    B, S, D = 2, 8, 32
    x = jax.random.normal(k1, (B, S, D), dtype=jnp.float32)
    stdv = 1.0 / math.sqrt(D)  # mirrors init_parameters()
    gamma = jax.random.uniform(k2, (D,), minval=-stdv, maxval=stdv,
                               dtype=jnp.float32)
    beta = jax.random.uniform(k3, (D,), minval=-stdv, maxval=stdv,
                              dtype=jnp.float32)
    out = jax.block_until_ready(normalization_forward(x, gamma, beta))
    ref = _reference(x, gamma, beta)
    assert out.shape == (B, S, D)
    assert jnp.allclose(out, ref, atol=1e-5, rtol=1e-5), "mismatch (fused)"

    # --- test 2: streamed two-pass path -------------------------------------
    # Exercises: multi-tile accumulation, 2-way core split with an odd tile
    # count (clamped + masked overshoot tile), partial last row tile, and
    # lane-dense grouping (D=64 -> Dg=128).
    B2, S2, D2 = 2, 1201, 64
    x2 = jax.random.normal(k4, (B2, S2, D2), dtype=jnp.float32)
    g2 = jnp.full((D2,), 0.7, jnp.float32)
    b2 = jnp.full((D2,), 0.1, jnp.float32)
    out2 = jax.block_until_ready(normalization_forward(
        x2, g2, b2, target_tile_bytes=64 * 512, fused_vmem_bytes=0))
    ref2 = _reference(x2, g2, b2)
    assert out2.shape == (B2, S2, D2)
    assert jnp.allclose(out2, ref2, atol=1e-3, rtol=1e-3), "mismatch (tiled)"

    # --- test 3: bf16 streamed path (pass-2 FMA in bf16) --------------------
    B3, S3, D3 = 4, 64, 128
    x3 = jax.random.normal(k5, (B3, S3, D3), dtype=jnp.float32
                           ).astype(jnp.bfloat16)
    g3 = jnp.ones((D3,), jnp.float32)
    b3 = jnp.zeros((D3,), jnp.float32)
    out3 = jax.block_until_ready(
        normalization_forward(x3, g3, b3, fused_vmem_bytes=0))
    ref3 = _reference(x3.astype(jnp.float32), g3, b3)
    assert out3.dtype == jnp.bfloat16
    assert jnp.allclose(out3.astype(jnp.float32), ref3,
                        atol=0.1, rtol=0.1), "mismatch (bf16)"

    # TODO(synk): InstanceNorm1d branch (normalization='instance') and
    # running_mean/running_var side-effect updates are not implemented; only
    # the default BatchNorm1d training-mode forward is reproduced.
    print("KERNEL_OK")
</pallas_src>

<mosaic_0001>
module attributes {stable_mosaic.version = 11 : i64} {
  func.func @_fused_kernel(%arg0: i32, %arg1: memref<16x32xf32, #tpu.memory_space<vmem>>, %arg2: memref<1x32xf32, #tpu.memory_space<vmem>>, %arg3: memref<1x32xf32, #tpu.memory_space<vmem>>, %arg4: memref<16x32xf32, #tpu.memory_space<vmem>>) attributes {dimension_semantics = [#tpu.dimension_semantics<arbitrary>], iteration_bounds = array<i64: 1>, scalar_prefetch = 0 : i64, scratch_operands = 0 : i64, tpu.core_type = #tpu.core_type<tc>, window_params = [{pipeline_mode = #tpu.pipeline_mode<synchronous>, transform_indices = @transform_0, window_bounds = array<i64: 16, 32>}, {pipeline_mode = #tpu.pipeline_mode<synchronous>, transform_indices = @transform_1, window_bounds = array<i64: 1, 32>}, {pipeline_mode = #tpu.pipeline_mode<synchronous>, transform_indices = @transform_2, window_bounds = array<i64: 1, 32>}, {pipeline_mode = #tpu.pipeline_mode<synchronous>, transform_indices = @transform_3, window_bounds = array<i64: 16, 32>}]} {
    %c0 = arith.constant 0 : index
    %c0_0 = arith.constant 0 : index
    %0 = vector.load %arg1[%c0, %c0_0] : memref<16x32xf32, #tpu.memory_space<vmem>>, vector<16x32xf32>
    %cst = arith.constant dense<0.000000e+00> : vector<32xf32>
    %1 = vector.multi_reduction <add>, %0, %cst [0] : vector<16x32xf32> to vector<32xf32>
    %2 = vector.shape_cast %1 : vector<32xf32> to vector<1x32xf32>
    %cst_1 = arith.constant 6.250000e-02 : f32
    %3 = vector.broadcast %cst_1 : f32 to vector<1x32xf32>
    %4 = arith.mulf %2, %3 : vector<1x32xf32>
    %5 = vector.broadcast %4 : vector<1x32xf32> to vector<16x32xf32>
    %6 = arith.subf %0, %5 : vector<16x32xf32>
    %7 = arith.mulf %6, %6 : vector<16x32xf32>
    %cst_2 = arith.constant dense<0.000000e+00> : vector<32xf32>
    %8 = vector.multi_reduction <add>, %7, %cst_2 [0] : vector<16x32xf32> to vector<32xf32>
    %9 = vector.shape_cast %8 : vector<32xf32> to vector<1x32xf32>
    %cst_3 = arith.constant 6.250000e-02 : f32
    %10 = vector.broadcast %cst_3 : f32 to vector<1x32xf32>
    %11 = arith.mulf %9, %10 : vector<1x32xf32>
    %cst_4 = arith.constant 9.99999974E-6 : f32
    %12 = vector.broadcast %cst_4 : f32 to vector<1x32xf32>
    %13 = arith.addf %11, %12 : vector<1x32xf32>
    %14 = math.rsqrt %13 : vector<1x32xf32>
    %c0_5 = arith.constant 0 : index
    %c0_6 = arith.constant 0 : index
    %15 = vector.load %arg2[%c0_5, %c0_6] : memref<1x32xf32, #tpu.memory_space<vmem>>, vector<1x32xf32>
    %16 = arith.mulf %15, %14 : vector<1x32xf32>
    %17 = vector.broadcast %16 : vector<1x32xf32> to vector<16x32xf32>
    %18 = arith.mulf %6, %17 : vector<16x32xf32>
    %c0_7 = arith.constant 0 : index
    %c0_8 = arith.constant 0 : index
    %19 = vector.load %arg3[%c0_7, %c0_8] : memref<1x32xf32, #tpu.memory_space<vmem>>, vector<1x32xf32>
    %20 = vector.broadcast %19 : vector<1x32xf32> to vector<16x32xf32>
    %21 = arith.addf %18, %20 : vector<16x32xf32>
    %c0_9 = arith.constant 0 : index
    %c0_10 = arith.constant 0 : index
    %22 = vector.load %arg4[%c0_9, %c0_10] : memref<16x32xf32, #tpu.memory_space<vmem>>, vector<16x32xf32>
    tpu.vector_store %arg4[%c0_9, %c0_10], %21 {strides = array<i32>} : memref<16x32xf32, #tpu.memory_space<vmem>>, vector<16x32xf32>,
    return
  }
  func.func @transform_0(%arg0: i32) -> (i32, i32) {
    %c0_i32 = arith.constant 0 : i32
    %c0_i32_0 = arith.constant 0 : i32
    %c0_i32_1 = arith.constant 0 : i32
    return %c0_i32, %c0_i32_0 : i32, i32
  }
  func.func @transform_1(%arg0: i32) -> (i32, i32) {
    %c0_i32 = arith.constant 0 : i32
    %c0_i32_0 = arith.constant 0 : i32
    %c0_i32_1 = arith.constant 0 : i32
    return %c0_i32, %c0_i32_0 : i32, i32
  }
  func.func @transform_2(%arg0: i32) -> (i32, i32) {
    %c0_i32 = arith.constant 0 : i32
    %c0_i32_0 = arith.constant 0 : i32
    %c0_i32_1 = arith.constant 0 : i32
    return %c0_i32, %c0_i32_0 : i32, i32
  }
  func.func @transform_3(%arg0: i32) -> (i32, i32) {
    %c0_i32 = arith.constant 0 : i32
    %c0_i32_0 = arith.constant 0 : i32
    %c0_i32_1 = arith.constant 0 : i32
    return %c0_i32, %c0_i32_0 : i32, i32
  }
}

</mosaic_0001>

<bundles_post_ra>
// kernel: tpu_custom_call.1
= control target key start
LH: loop header
LB: loop body
LE: loop exit
PB: predicated region body
PF: predicated region fallthrough
CT: control target
= control target key end

     0   :  { %8 = vsyncpa [#allocation3], 0  ;;  %s217_s0 = inlined_call_operand.hbm [shape: f32[16,32], index: 0, kind: input, shape index: {}]   ;;  %s218_s1 = inlined_call_operand.vmem [shape: f32[1,32], index: 1, kind: input, shape index: {}]   ;;  %s219_s2 = inlined_call_operand.vmem [shape: f32[1,32], index: 2, kind: input, shape index: {}]   ;;  %s220_s3 = inlined_call_operand.hbm [shape: f32[16,32], index: 3, kind: output, shape index: {}]  }
   0x1   :  { %9 = vsyncpa [#allocation4], 0  ;;  %s151_s12 = smov [#allocation2]   ;;  %s103_s16 = scalar_lea.hbm %s217_s0, 256 }
   0x2   :  { %s15_s13 = sshll.u32 %s151_s12, 4  ;;  %p104_p0 = scmp.ne.s32.totalorder %s217_s0, %s103_s16  ;;  %s16_s13 = int_to_ptr.vmem [resolvable:$true] %s15_s13 }
   0x3   :  { %p107_p1 = scmp.lt.u32.totalorder %s103_s16, %s217_s0 }
   0x5   :  { %p109_p2 = pnand %p107_p1, %p104_p0 }
   0x7   :  { %112 = shalt.err (!%p109_p2)
}
   0x8   :  { %s113_s21 = scalar_lea.vmem %s16_s13, 256  ;;  %p118_p4 = scmp.lt.s32.totalorder %s16_s13, %s16_s13 }
   0x9   :  { %p114_p3 = scmp.ne.s32.totalorder %s16_s13, %s113_s21  ;;  %p119_p5 = scmp.lt.s32.totalorder %s113_s21, %s113_s21 }
   0xb   :  { %p120_p6 = por %p119_p5, %p118_p4 }
   0xd   :  { %p121_p7 = pnand %p120_p6, %p114_p3 }
   0xf   :  { %124 = shalt.err (!%p121_p7)
}
  0x10   :  { %s152_s22 = smov 128   ;;  %s153_s23 = smov 8  }
  0x11   :  { %21 = dma.hbm_to_vmem [thread:$0]  %s217_s0, 256, %s16_s13, [#allocation3], %s152_s22, %s152_s22, %s153_s23  }
  0x12   :  { %147 = dma.done.wait [#allocation3], 256  }
  0x13   :  { %148 = vsyncadd [#allocation3], 4294967040  ;;  %vm31_vm0 = vcmask 261120   ;;  %v29_v0 = vld [vmem:[#allocation2] sm:$0xff]  ;;  %v30_v1 = vld [vmem:[#allocation2 + $0x8] sm:$0xff]  ;;  %v61_v27 = vlaneseq  ;;  %s154_s29 = smov [#allocation5]  }
  0x14   :  { %v32_v2 = vsel %vm31_vm0, %v29_v0, 0.0  ;;  %v33_v3 = vsel %vm31_vm0, %v30_v1, 0.0  ;;  %v58_v29 = vld [vmem:[%s218_s1] sm:$0x1]  ;;  %s84_s30 = sshll.u32 %s154_s29, 4  ;;  %s85_s30 = int_to_ptr.vmem [resolvable:$true] %s84_s30 }
  0x15   :  { %v34_v4 = vadd.f32 %v33_v3, %v32_v2  ;;  %v62_v28 = vshrl.u32 %v61_v27, 7  ;;  %v96_v34 = vld [vmem:[%s219_s2] ss:$0 sm:$0xff]  ;;  %s125_s1 = scalar_lea.vmem %s85_s30, 256  ;;  %p130_p9 = scmp.lt.s32.totalorder %s85_s30, %s85_s30 }
  0x16   :  { %p126_p8 = scmp.ne.s32.totalorder %s85_s30, %s125_s1  ;;  %p131_p10 = scmp.lt.s32.totalorder %s125_s1, %s125_s1 }
  0x17   :  { %v35_v5 = vrot.slane %v34_v4, 4  ;;  %v63_v30 = vsub.s32 0, %v62_v28 }
  0x18   :  { %p132_p11 = por %p131_p10, %p130_p9 }
  0x19   :  { %v36_v6 = vadd.f32 %v35_v5, %v34_v4 }
  0x1a   :  { %p133_p12 = pnand %p132_p11, %p126_p8 }
  0x1b   :  { %v37_v7 = vrot.slane %v36_v6, 2 }
  0x1d   :  { %v38_v8 = vadd.f32 %v37_v7, %v36_v6 }
  0x1f   :  { %v39_v9 = vrot.slane %v38_v8, 1 }
  0x21   :  { %v40_v10 = vadd.f32 %v39_v9, %v38_v8 }
  0x23   :  { %v41_v11 = vmul.f32 0.0625, %v40_v10 }
  0x25   :  { %v42_v12 = vsub.f32 %v29_v0, %v41_v11  ;;  %v43_v13 = vsub.f32 %v30_v1, %v41_v11 }
  0x27   :  { %v44_v14 = vmul.f32 %v42_v12, %v42_v12  ;;  %v45_v15 = vmul.f32 %v43_v13, %v43_v13 }
  0x29   :  { %v46_v16 = vsel %vm31_vm0, %v44_v14, 0.0  ;;  %v47_v17 = vsel %vm31_vm0, %v45_v15, 0.0 }
  0x2a   :  { %v48_v18 = vadd.f32 %v47_v17, %v46_v16 }
  0x2c   :  { %v49_v19 = vrot.slane %v48_v18, 4 }
  0x2e   :  { %v50_v20 = vadd.f32 %v49_v19, %v48_v18 }
  0x30   :  { %v51_v21 = vrot.slane %v50_v20, 2 }
  0x32   :  { %v52_v22 = vadd.f32 %v51_v21, %v50_v20 }
  0x34   :  { %v53_v23 = vrot.slane %v52_v22, 1 }
  0x36   :  { %v54_v24 = vadd.f32 %v53_v23, %v52_v22 }
  0x38   :  { %v55_v25 = vmul.f32 0.0625, %v54_v24 }
  0x3a   :  { %v56_v26 = vadd.f32 1e-05, %v55_v25 }
  0x3c   :  { %101 = vrsqrt.f32 %v56_v26 }
  0x46   :  { %v102_v31 = vpop.eup %101 }
  0x47   :  { %v59_v32 = vmul.f32 %v102_v31, %v58_v29 }
  0x49   :  { %v64_v33 = vrot.slane %v59_v32, %v63_v30 }
  0x4b   :  { %v66_v35 = vmul.f32 %v64_v33, %v42_v12  ;;  %v67_v36 = vmul.f32 %v64_v33, %v43_v13 }
  0x4d   :  { %v75_v37 = vadd.f32 %v96_v34, %v66_v35  ;;  %v76_v38 = vadd.f32 %v96_v34, %v67_v36 }
  0x4f   :  { %77 = vst.msk [vmem:[#allocation5] sm:$0xff] %vm31_vm0, %v75_v37  ;;  %78 = vst.msk [vmem:[#allocation5 + $0x8] sm:$0xff] %vm31_vm0, %v76_v38 }
  0x50   :  { %136 = shalt.err (!%p133_p12)
}
  0x51   :  { %s137_s5 = scalar_lea.hbm %s220_s3, 256 }
  0x52   :  { %p138_p13 = scmp.ne.s32.totalorder %s220_s3, %s137_s5  ;;  %p141_p0 = scmp.lt.u32.totalorder %s137_s5, %s220_s3 }
  0x54   :  { %p143_p1 = pnand %p141_p0, %p138_p13 }
  0x56   :  { %146 = shalt.err (!%p143_p1)
}
  0x57   :  { %90 = dma.vmem_to_hbm [thread:$0]  %s85_s30, 256, %s220_s3, [#allocation4], %s152_s22, %s152_s22, %s153_s23  }
  0x58   :  { %149 = dma.done.wait [#allocation4], 256  }
  0x59   :  { %150 = vsyncadd [#allocation4], 4294967040 }
  0x5a   :  { %94 = vsyncpa [#allocation3], 1 }
  0x5b   :  { %95 = vsyncpa [#allocation4], 1 }

</bundles_post_ra>
